<compile_context>
chip_gen: v6e
topology: v6e:2x2x1
jax: 0.10.0
libtpu: 0.0.40
codegen_flags: <defaults>
</compile_context>

<pallas_src>
import functools

import jax
import jax.numpy as jnp
from jax.experimental import pallas as pl
from jax.experimental.pallas import tpu as pltpu


def _round_up(v: int, m: int) -> int:
    return ((v + m - 1) // m) * m


def _pad_to(x, shape, value=0.0):
    pads = [(0, t - s) for s, t in zip(x.shape, shape)]
    return jnp.pad(x, pads, constant_values=value)


def gcn_kernel(a_ref, x_ref, w1_ref, bias_ref, w2_ref, out_ref):
    a = a_ref[...]                 # bf16 [Np, Np]
    x = x_ref[...]                 # bf16 [Np, Fp]
    b1 = bias_ref[0:1, :]          # f32  [1, Hp]
    b2 = bias_ref[1:2, :]          # f32  [1, Cp]  (padded cols pre-filled -1e30)

    # ---- layer 1: GCNConv(F -> H):  A_hat @ (X @ W1) + b1, then ReLU ----
    xw = jnp.dot(x, w1_ref[...], preferred_element_type=jnp.float32)        # [Np, Hp]
    h = jnp.dot(a, xw.astype(jnp.bfloat16),
                preferred_element_type=jnp.float32) + b1
    h = jnp.maximum(h, 0.0)                                                  # F.relu (f32)

    # ---- layer 2: GCNConv(H -> C):  A_hat @ (H @ W2) + b2 ----
    hw = jnp.dot(h.astype(jnp.bfloat16), w2_ref[...],
                 preferred_element_type=jnp.float32)                         # [Np, Cp]
    z = jnp.dot(a, hw.astype(jnp.bfloat16),
                preferred_element_type=jnp.float32) + b2

    # ---- log_softmax over dim=1 ----
    # Padded class columns already carry -1e30 (via b2 padding): exp -> 0, so
    # no iota/where mask is needed.
    m = jnp.max(z, axis=1, keepdims=True)
    zs = z - m
    lse = jnp.log(jnp.sum(jnp.exp(zs), axis=1, keepdims=True))
    out_ref[...] = (zs - lse).astype(out_ref.dtype)


def make_gcn_forward(a_norm, w1, b1, w2, b2):
    """Pads/casts parameters once and returns a jitted forward(x) callable."""
    n = a_norm.shape[0]
    f_in, hidden = w1.shape
    c = w2.shape[1]

    # Row (sublane) dims -> multiple of 64, lane (last) dims -> multiple of 128.
    n_p = _round_up(n, 64)
    f_p = _round_up(f_in, 128)
    h_p = _round_up(hidden, 128)
    c_p = _round_up(c, 128)
    assert h_p == c_p, "bias packing assumes padded hidden == padded classes"

    # One-time padding + casts (cached across forward calls).
    a_p = _pad_to(a_norm, (n_p, n_p)).astype(jnp.bfloat16)
    w1_p = _pad_to(w1, (f_p, h_p)).astype(jnp.bfloat16)
    w2_p = _pad_to(w2, (h_p, c_p)).astype(jnp.bfloat16)
    b1_p = _pad_to(b1.reshape(1, -1).astype(jnp.float32), (1, h_p), 0.0)
    b2_p = _pad_to(b2.reshape(1, -1).astype(jnp.float32), (1, c_p), -1e30)
    bias_p = jnp.concatenate([b1_p, b2_p], axis=0)            # f32 [2, 128]

    kernel_call = pl.pallas_call(
        gcn_kernel,
        out_shape=jax.ShapeDtypeStruct((n_p, c_p), jnp.bfloat16),
        in_specs=[pl.BlockSpec(memory_space=pltpu.MemorySpace.VMEM)] * 5,
        out_specs=pl.BlockSpec(memory_space=pltpu.MemorySpace.VMEM),
    )

    @jax.jit
    def forward(x):
        x_p = _pad_to(x, (n_p, f_p)).astype(jnp.bfloat16)
        out_p = kernel_call(a_p, x_p, w1_p, bias_p, w2_p)
        return out_p[:n, :c]

    return forward


def build_normalized_adjacency(edge_index, num_nodes):
    """Dense D^{-1/2} (A + I) D^{-1/2}, matching GCNConv's default norm.
    (Duplicate edges collapse via .set(); only affects the synthetic test.)"""
    src, dst = edge_index[0], edge_index[1]
    adj = jnp.zeros((num_nodes, num_nodes), jnp.float32)
    adj = adj.at[src, dst].set(1.0)
    adj = adj + jnp.eye(num_nodes, dtype=jnp.float32)        # add self loops
    deg = jnp.sum(adj, axis=1)
    d_inv_sqrt = jnp.where(deg > 0, 1.0 / jnp.sqrt(deg), 0.0)
    return d_inv_sqrt[:, None] * adj * d_inv_sqrt[None, :]


if __name__ == "__main__":
    # Karate-Club-like sizes: 34 nodes, identity node features (F=34),
    # hidden=10, num_classes=4.
    N, F_IN, HIDDEN, NUM_CLASSES = 34, 34, 10, 4

    key = jax.random.PRNGKey(0)
    k_edges, k_w1, k_w2 = jax.random.split(key, 3)

    # Deterministic synthetic undirected edge list (both directions stored,
    # as torch_geometric does).
    num_raw_edges = 78
    pairs = jax.random.randint(k_edges, (2, num_raw_edges), 0, N, dtype=jnp.int32)
    edge_index = jnp.concatenate(
        [pairs, jnp.stack([pairs[1], pairs[0]])], axis=1)    # [2, 156]

    # Node features: identity matrix, as in the KarateClub dataset.
    x = jnp.eye(N, F_IN, dtype=jnp.float32)

    # Deterministic parameter init (glorot-ish scaling, zero bias).
    w1 = jax.random.normal(k_w1, (F_IN, HIDDEN), jnp.float32) * (1.0 / jnp.sqrt(F_IN))
    b1 = jnp.zeros((1, HIDDEN), jnp.float32)
    w2 = jax.random.normal(k_w2, (HIDDEN, NUM_CLASSES), jnp.float32) * (1.0 / jnp.sqrt(HIDDEN))
    b2 = jnp.zeros((1, NUM_CLASSES), jnp.float32)

    a_norm = build_normalized_adjacency(edge_index, N)

    gcn_forward = make_gcn_forward(a_norm, w1, b1, w2, b2)   # pad/cast params once
    out = gcn_forward(x)
    jax.block_until_ready(out)
    assert out.shape == (N, NUM_CLASSES)
    assert out.dtype == jnp.bfloat16

    # Pure-JAX reference with the SAME bf16-input / f32-accumulate matmul
    # numerics; the kernel additionally rounds the final log-probs to bf16,
    # hence the slightly looser tolerance.
    a_bf = a_norm.astype(jnp.bfloat16)
    x_bf = x.astype(jnp.bfloat16)
    w1_bf = w1.astype(jnp.bfloat16)
    w2_bf = w2.astype(jnp.bfloat16)
    xw = jnp.dot(x_bf, w1_bf, preferred_element_type=jnp.float32)
    ref_h = jnp.maximum(
        jnp.dot(a_bf, xw.astype(jnp.bfloat16), preferred_element_type=jnp.float32) + b1,
        0.0)
    hw = jnp.dot(ref_h.astype(jnp.bfloat16), w2_bf, preferred_element_type=jnp.float32)
    ref_z = jnp.dot(a_bf, hw.astype(jnp.bfloat16), preferred_element_type=jnp.float32) + b2
    ref = jax.nn.log_softmax(ref_z, axis=1)
    assert jnp.allclose(out.astype(jnp.float32), ref, atol=2e-2, rtol=2e-2), (
        float(jnp.max(jnp.abs(out.astype(jnp.float32) - ref))))

    print("KERNEL_OK")
</pallas_src>

<mosaic_0001>
module attributes {stable_mosaic.version = 11 : i64} {
  func.func @gcn_kernel(%arg0: memref<64x64xbf16, #tpu.memory_space<vmem>>, %arg1: memref<64x128xbf16, #tpu.memory_space<vmem>>, %arg2: memref<128x128xbf16, #tpu.memory_space<vmem>>, %arg3: memref<2x128xf32, #tpu.memory_space<vmem>>, %arg4: memref<128x128xbf16, #tpu.memory_space<vmem>>, %arg5: memref<64x128xbf16, #tpu.memory_space<vmem>>) attributes {dimension_semantics = [], scalar_prefetch = 0 : i64, scratch_operands = 0 : i64, tpu.core_type = #tpu.core_type<tc>} {
    %c0 = arith.constant 0 : index
    %c0_0 = arith.constant 0 : index
    %0 = vector.load %arg0[%c0, %c0_0] : memref<64x64xbf16, #tpu.memory_space<vmem>>, vector<64x64xbf16>
    %c0_1 = arith.constant 0 : index
    %c0_2 = arith.constant 0 : index
    %1 = vector.load %arg1[%c0_1, %c0_2] : memref<64x128xbf16, #tpu.memory_space<vmem>>, vector<64x128xbf16>
    %c0_3 = arith.constant 0 : index
    %c0_4 = arith.constant 0 : index
    %2 = vector.load %arg3[%c0_3, %c0_4] : memref<2x128xf32, #tpu.memory_space<vmem>>, vector<1x128xf32>
    %c1 = arith.constant 1 : index
    %c0_5 = arith.constant 0 : index
    %3 = vector.load %arg3[%c1, %c0_5] : memref<2x128xf32, #tpu.memory_space<vmem>>, vector<1x128xf32>
    %c0_6 = arith.constant 0 : index
    %c0_7 = arith.constant 0 : index
    %4 = vector.load %arg2[%c0_6, %c0_7] : memref<128x128xbf16, #tpu.memory_space<vmem>>, vector<128x128xbf16>
    %cst = arith.constant dense<0.000000e+00> : vector<64x128xf32>
    %5 = tpu.matmul %1, %4, %cst {dimension_numbers = #tpu.dot_dimension_numbers<[1], [0], [0], [1], [0, 0, 1, 1], [], []>} : vector<64x128xbf16>, vector<128x128xbf16>, vector<64x128xf32> -> vector<64x128xf32>
    %6 = arith.truncf %5 : vector<64x128xf32> to vector<64x128xbf16>
    %cst_8 = arith.constant dense<0.000000e+00> : vector<64x128xf32>
    %7 = tpu.matmul %0, %6, %cst_8 {dimension_numbers = #tpu.dot_dimension_numbers<[1], [0], [0], [1], [0, 0, 1, 1], [], []>} : vector<64x64xbf16>, vector<64x128xbf16>, vector<64x128xf32> -> vector<64x128xf32>
    %8 = vector.broadcast %2 : vector<1x128xf32> to vector<64x128xf32>
    %9 = arith.addf %7, %8 : vector<64x128xf32>
    %cst_9 = arith.constant 0.000000e+00 : f32
    %10 = vector.broadcast %cst_9 : f32 to vector<64x128xf32>
    %11 = arith.maximumf %9, %10 : vector<64x128xf32>
    %12 = arith.truncf %11 : vector<64x128xf32> to vector<64x128xbf16>
    %c0_10 = arith.constant 0 : index
    %c0_11 = arith.constant 0 : index
    %13 = vector.load %arg4[%c0_10, %c0_11] : memref<128x128xbf16, #tpu.memory_space<vmem>>, vector<128x128xbf16>
    %cst_12 = arith.constant dense<0.000000e+00> : vector<64x128xf32>
    %14 = tpu.matmul %12, %13, %cst_12 {dimension_numbers = #tpu.dot_dimension_numbers<[1], [0], [0], [1], [0, 0, 1, 1], [], []>} : vector<64x128xbf16>, vector<128x128xbf16>, vector<64x128xf32> -> vector<64x128xf32>
    %15 = arith.truncf %14 : vector<64x128xf32> to vector<64x128xbf16>
    %cst_13 = arith.constant dense<0.000000e+00> : vector<64x128xf32>
    %16 = tpu.matmul %0, %15, %cst_13 {dimension_numbers = #tpu.dot_dimension_numbers<[1], [0], [0], [1], [0, 0, 1, 1], [], []>} : vector<64x64xbf16>, vector<64x128xbf16>, vector<64x128xf32> -> vector<64x128xf32>
    %17 = vector.broadcast %3 : vector<1x128xf32> to vector<64x128xf32>
    %18 = arith.addf %16, %17 : vector<64x128xf32>
    %cst_14 = arith.constant dense<0xFF800000> : vector<64xf32>
    %19 = vector.multi_reduction <maximumf>, %18, %cst_14 [1] : vector<64x128xf32> to vector<64xf32>
    %20 = vector.shape_cast %19 : vector<64xf32> to vector<64x1xf32>
    %21 = vector.broadcast %20 : vector<64x1xf32> to vector<64x128xf32>
    %22 = arith.subf %18, %21 : vector<64x128xf32>
    %23 = math.exp %22 : vector<64x128xf32>
    %cst_15 = arith.constant dense<0.000000e+00> : vector<64xf32>
    %24 = vector.multi_reduction <add>, %23, %cst_15 [1] : vector<64x128xf32> to vector<64xf32>
    %25 = vector.shape_cast %24 : vector<64xf32> to vector<64x1xf32>
    %26 = math.log %25 : vector<64x1xf32>
    %27 = vector.broadcast %26 : vector<64x1xf32> to vector<64x128xf32>
    %28 = arith.subf %22, %27 : vector<64x128xf32>
    %29 = arith.truncf %28 : vector<64x128xf32> to vector<64x128xbf16>
    %c0_16 = arith.constant 0 : index
    %c0_17 = arith.constant 0 : index
    %30 = vector.load %arg5[%c0_16, %c0_17] : memref<64x128xbf16, #tpu.memory_space<vmem>>, vector<64x128xbf16>
    tpu.vector_store %arg5[%c0_16, %c0_17], %29 {strides = array<i32>} : memref<64x128xbf16, #tpu.memory_space<vmem>>, vector<64x128xbf16>,
    return
  }
}

</mosaic_0001>

<bundles_post_ra>
// kernel: forward.1
= control target key start
LH: loop header
LB: loop body
LE: loop exit
PB: predicated region body
PF: predicated region fallthrough
CT: control target
= control target key end

     0   :  { %10 = vsyncpa [#allocation3], 0  ;;  %s925_s18 = smov [#allocation2]   ;;  %s1079_s0 = inlined_call_operand.vmem [shape: bf16[64,64], index: 0, kind: input, shape index: {}]   ;;  %s1080_s1 = inlined_call_operand.vmem [shape: bf16[64,128], index: 1, kind: input, shape index: {}]   ;;  %s1081_s2 = inlined_call_operand.hbm [shape: bf16[128,128], index: 2, kind: input, shape index: {}]   ;;  %s1082_s3 = inlined_call_operand.vmem [shape: f32[2,128], index: 3, kind: input, shape index: {}]   ;;  %s1083_s4 = inlined_call_operand.vmem [shape: bf16[128,128], index: 4, kind: input, shape index: {}]   ;;  %s1084_s5 = inlined_call_operand.vmem [shape: bf16[64,128], index: 5, kind: output, shape index: {}]  }
   0x1   :  { %s20_s19 = sshll.u32 %s925_s18, 4  ;;  %s21_s19 = int_to_ptr.vmem [resolvable:$true] %s20_s19 }
   0x2   :  { %s911_s20 = scalar_lea.vmem %s21_s19, 1024  ;;  %p916_p1 = scmp.lt.s32.totalorder %s21_s19, %s21_s19 }
   0x3   :  { %p912_p0 = scmp.ne.s32.totalorder %s21_s19, %s911_s20  ;;  %p917_p2 = scmp.lt.s32.totalorder %s911_s20, %s911_s20 }
   0x5   :  { %p918_p3 = por %p917_p2, %p916_p1 }
   0x7   :  { %p919_p4 = pnand %p918_p3, %p912_p0 }
   0x9   :  { %922 = shalt.err (!%p919_p4)
}
   0xa   :  { %s926_s21 = smov 64   ;;  %s927_s22 = smov 4  }
   0xb   :  { %26 = dma.hbm_to_vmem [thread:$0]  %s1081_s2, 1024, %s21_s19, [#allocation3], %s926_s21, %s926_s21, %s927_s22  }
   0xc   :  { %923 = dma.done.wait [#allocation3], 1024  }
   0xd   :  { %924 = vsyncadd [#allocation3], 4294966272  ;;  %v847_v0 = vld [vmem:[#allocation2 + $0x38] sm:$0xff]   ;;  %v848_v1 = vld [vmem:[#allocation2 + $0x30] sm:$0xff]   ;;  %vm234_vm0 = vcmask 523264  }
   0xe   :  { %764 = vmatprep.subr.bf16.mxu0 %v847_v0  ;;  %v849_v2 = vld [vmem:[#allocation2 + $0x28] sm:$0xff]   ;;  %v850_v3 = vld [vmem:[#allocation2 + $0x20] sm:$0xff]   ;;  %v851_v5 = vld [vmem:[#allocation2 + $0x18] sm:$0xff]  }
   0xf   :  { %765 = vmatpush3.bf16.msra.mxu0 %v847_v0  ;;  %v855_v4 = vld [vmem:[%s1080_s1] sm:$0xff]   ;;  %v852_v6 = vld [vmem:[#allocation2 + $0x10] sm:$0xff]   ;;  %v853_v7 = vld [vmem:[#allocation2 + $0x8] sm:$0xff]  }
  0x10   :  { %766 = vmatprep.subr.bf16.mxu0 %v848_v1  ;;  %780 = vmatprep.mubr.bf16.mxu0 %v855_v4  ;;  %v854_v8 = vld [vmem:[#allocation2] sm:$0xff]   ;;  %v856_v9 = vld [vmem:[%s1080_s1 + $0x8] sm:$0xff]   ;;  %v857_v10 = vld [vmem:[%s1080_s1 + $0x10] sm:$0xff]  }
  0x11   :  { %v858_v11 = vld [vmem:[%s1080_s1 + $0x18] sm:$0xff]   ;;  %v859_v12 = vld [vmem:[%s1079_s0] sm:$0xff]   ;;  %v984_v26 = vld [vmem:[%s1079_s0 + $0x8] sm:$0xff]  }
  0x12   :  { %796 = vmatprep.mubr.msk.bf16.mxu1 %vm234_vm0, %v859_v12  ;;  %v863_v25 = vld [vmem:[%s1083_s4 + $0x38] sm:$0xff]   ;;  %v989_v27 = vld [vmem:[%s1079_s0 + $0x10] sm:$0xff]   ;;  %v865_v29 = vld [vmem:[%s1083_s4 + $0x28] sm:$0xff]  }
  0x13   :  { %767 = vmatpush3.bf16.msra.mxu0 %v848_v1  ;;  %v864_v28 = vld [vmem:[%s1083_s4 + $0x30] sm:$0xff]   ;;  %v1004_v30 = vld [vmem:[%s1079_s0 + $0x18] sm:$0xff]   ;;  %v866_v31 = vld [vmem:[%s1083_s4 + $0x20] sm:$0xff]  }
  0x14   :  { %768 = vmatprep.subr.bf16.mxu0 %v849_v2  ;;  %v867_v32 = vld [vmem:[%s1083_s4 + $0x18] sm:$0xff]   ;;  %v868_v33 = vld [vmem:[%s1083_s4 + $0x10] sm:$0xff]   ;;  %v869_v34 = vld [vmem:[%s1083_s4 + $0x8] sm:$0xff]  }
  0x15   :  { %v870_v35 = vld [vmem:[%s1083_s4] sm:$0xff]  }
  0x16   :  { %v663_v38 = vld [vmem:[%s1082_s3] ss:$0 sm:$0xff] }
  0x17   :  { %769 = vmatpush3.bf16.msra.mxu0 %v849_v2 }
  0x18   :  { %770 = vmatprep.subr.bf16.mxu0 %v850_v3 }
  0x1b   :  { %771 = vmatpush3.bf16.msra.mxu0 %v850_v3 }
  0x1c   :  { %772 = vmatprep.subr.bf16.mxu0 %v851_v5 }
  0x1f   :  { %773 = vmatpush3.bf16.msra.mxu0 %v851_v5 }
  0x20   :  { %774 = vmatprep.subr.bf16.mxu0 %v852_v6 }
  0x23   :  { %775 = vmatpush3.bf16.msra.mxu0 %v852_v6 }
  0x24   :  { %776 = vmatprep.subr.bf16.mxu0 %v853_v7 }
  0x27   :  { %777 = vmatpush3.bf16.msra.mxu0 %v853_v7 }
  0x28   :  { %778 = vmatprep.subr.bf16.mxu0 %v854_v8 }
  0x2b   :  { %779 = vmatpush3.bf16.msra.mxu0 %v854_v8 }
  0x2e   :  { %781 = vmatmul.mubr.bf16.vlgmr.msra.gmra.mxu0 %v856_v9 }
  0x2f   :  { %784 = vmatprep.mubr.bf16.mxu0 %v857_v10 }
  0x36   :  { %785 = vmatmul.mubr.bf16.gmra.mxu0 %v858_v11 }
  0x37   :  { %836 = vmatprep.mubr.msk.bf16.mxu0 %vm234_vm0, %v859_v12 }
  0xee   :  { %v782_v13 = vpop.f32.mrf.mxu0 }
  0xf0   :  { %v175_v14 = vpop.f32.mrf.mxu0 }
  0xf2   :  { %v783_v15 = vpop.f32.mrf.mxu0 }
  0xf3   :  { %v207_v23 = vpack.c.bf16 %v783_v15, %v782_v13  ;;  %v680_v13 = vld [vmem:[%s1082_s3 + $0x1] ss:$0 sm:$0xff] }
  0xf4   :  { %v178_v16 = vpop.f32.mrf.mxu0 }
  0xf5   :  { %v206_v24 = vpack.c.bf16 %v178_v16, %v175_v14 }
  0xf6   :  { %v786_v17 = vpop.f32.mrf.mxu0 }
  0xf8   :  { %v191_v18 = vpop.f32.mrf.mxu0 }
  0xfa   :  { %v787_v19 = vpop.f32.mrf.mxu0 }
  0xfb   :  { %v209_v20 = vpack.c.bf16 %v787_v19, %v786_v17 }
  0xfc   :  { %v194_v21 = vpop.f32.mrf.mxu0 }
  0xfd   :  { %v208_v22 = vpack.c.bf16 %v194_v21, %v191_v18  ;;  %788 = vmatprep.subr.bf16.mxu1 %v209_v20 }
  0xfe   :  { %789 = vmatpush3.bf16.msra.mxu1 %v209_v20 }
  0xff   :  { %790 = vmatprep.subr.bf16.mxu1 %v208_v22 }
 0x102   :  { %791 = vmatpush3.bf16.msra.mxu1 %v208_v22 }
 0x103   :  { %792 = vmatprep.subr.bf16.mxu1 %v207_v23 }
 0x106   :  { %793 = vmatpush3.bf16.msra.mxu1 %v207_v23 }
 0x107   :  { %794 = vmatprep.subr.bf16.mxu1 %v206_v24 }
 0x10a   :  { %795 = vmatpush3.bf16.msra.mxu1 %v206_v24 }
 0x10b   :  { %804 = vmatprep.subr.bf16.mxu1 %v863_v25 }
 0x10d   :  { %797 = vmatmul.mubr.msk.bf16.vlgmr.msra.gmra.mxu1 %vm234_vm0, %v984_v26 }
 0x10e   :  { %800 = vmatprep.mubr.msk.bf16.mxu1 %vm234_vm0, %v989_v27  ;;  %805 = vmatpush3.bf16.msra.mxu1 %v863_v25 }
 0x10f   :  { %806 = vmatprep.subr.bf16.mxu1 %v864_v28 }
 0x112   :  { %807 = vmatpush3.bf16.msra.mxu1 %v864_v28 }
 0x113   :  { %808 = vmatprep.subr.bf16.mxu1 %v865_v29 }
 0x115   :  { %801 = vmatmul.mubr.msk.bf16.gmra.mxu1 %vm234_vm0, %v1004_v30 }
 0x116   :  { %809 = vmatpush3.bf16.msra.mxu1 %v865_v29 }
 0x117   :  { %810 = vmatprep.subr.bf16.mxu1 %v866_v31 }
 0x11a   :  { %811 = vmatpush3.bf16.msra.mxu1 %v866_v31 }
 0x11b   :  { %812 = vmatprep.subr.bf16.mxu1 %v867_v32 }
 0x11e   :  { %813 = vmatpush3.bf16.msra.mxu1 %v867_v32 }
 0x11f   :  { %814 = vmatprep.subr.bf16.mxu1 %v868_v33 }
 0x122   :  { %815 = vmatpush3.bf16.msra.mxu1 %v868_v33 }
 0x123   :  { %816 = vmatprep.subr.bf16.mxu1 %v869_v34 }
 0x126   :  { %817 = vmatpush3.bf16.msra.mxu1 %v869_v34 }
 0x127   :  { %818 = vmatprep.subr.bf16.mxu1 %v870_v35 }
 0x12a   :  { %819 = vmatpush3.bf16.msra.mxu1 %v870_v35 }
 0x1cd   :  { %v798_v36 = vpop.f32.mrf.mxu1 }
 0x1ce   :  { %v290_v42 = vadd.f32 %v798_v36, %v663_v38 }
 0x1cf   :  { %v281_v37 = vpop.f32.mrf.mxu1 }
 0x1d0   :  { %v282_v40 = vadd.f32 %v663_v38, %v281_v37  ;;  %v314_v49 = vmax.f32 %v290_v42, 0.0 }
 0x1d1   :  { %v799_v39 = vpop.f32.mrf.mxu1 }
 0x1d2   :  { %v293_v41 = vadd.f32 %v799_v39, %v663_v38  ;;  %v312_v47 = vmax.f32 %v282_v40, 0.0 }
 0x1d3   :  { %v284_v43 = vpop.f32.mrf.mxu1 }
 0x1d4   :  { %v285_v44 = vadd.f32 %v663_v38, %v284_v43  ;;  %v315_v45 = vmax.f32 %v293_v41, 0.0 }
 0x1d5   :  { %v802_v46 = vpop.f32.mrf.mxu1 }
 0x1d6   :  { %v313_v48 = vmax.f32 %v285_v44, 0.0  ;;  %v321_v52 = vpack.c.bf16 %v315_v45, %v314_v49  ;;  %v306_v56 = vadd.f32 %v802_v46, %v663_v38 }
 0x1d7   :  { %v297_v50 = vpop.f32.mrf.mxu1 }
 0x1d8   :  { %v320_v51 = vpack.c.bf16 %v313_v48, %v312_v47  ;;  %v298_v54 = vadd.f32 %v663_v38, %v297_v50  ;;  %v318_v62 = vmax.f32 %v306_v56, 0.0 }
 0x1d9   :  { %v803_v53 = vpop.f32.mrf.mxu1 }
 0x1da   :  { %v309_v55 = vadd.f32 %v803_v53, %v663_v38  ;;  %820 = vmatprep.mubr.bf16.mxu1 %v320_v51  ;;  %v316_v60 = vmax.f32 %v298_v54, 0.0 }
 0x1db   :  { %v300_v57 = vpop.f32.mrf.mxu1  ;;  %821 = vmatmul.mubr.bf16.vlgmr.msra.gmra.mxu1 %v321_v52 }
 0x1dc   :  { %v301_v58 = vadd.f32 %v663_v38, %v300_v57  ;;  %v319_v59 = vmax.f32 %v309_v55, 0.0 }
 0x1de   :  { %v317_v61 = vmax.f32 %v301_v58, 0.0  ;;  %v323_v0 = vpack.c.bf16 %v319_v59, %v318_v62 }
 0x1e0   :  { %v322_v63 = vpack.c.bf16 %v317_v61, %v316_v60 }
 0x1e2   :  { %824 = vmatprep.mubr.bf16.mxu1 %v322_v63 }
 0x1e3   :  { %825 = vmatmul.mubr.bf16.gmra.mxu1 %v323_v0 }
 0x29b   :  { %v822_v1 = vpop.f32.mrf.mxu1 }
 0x29d   :  { %v422_v2 = vpop.f32.mrf.mxu1 }
 0x29f   :  { %v823_v3 = vpop.f32.mrf.mxu1 }
 0x2a0   :  { %v454_v11 = vpack.c.bf16 %v823_v3, %v822_v1 }
 0x2a1   :  { %v425_v4 = vpop.f32.mrf.mxu1 }
 0x2a2   :  { %v453_v12 = vpack.c.bf16 %v425_v4, %v422_v2 }
 0x2a3   :  { %v826_v5 = vpop.f32.mrf.mxu1 }
 0x2a5   :  { %v438_v6 = vpop.f32.mrf.mxu1 }
 0x2a7   :  { %v827_v7 = vpop.f32.mrf.mxu1 }
 0x2a8   :  { %v456_v8 = vpack.c.bf16 %v827_v7, %v826_v5 }
 0x2a9   :  { %v441_v9 = vpop.f32.mrf.mxu1 }
 0x2aa   :  { %v455_v10 = vpack.c.bf16 %v441_v9, %v438_v6  ;;  %828 = vmatprep.subr.bf16.mxu0 %v456_v8 }
 0x2ab   :  { %829 = vmatpush3.bf16.msra.mxu0 %v456_v8 }
 0x2ac   :  { %830 = vmatprep.subr.bf16.mxu0 %v455_v10 }
 0x2af   :  { %831 = vmatpush3.bf16.msra.mxu0 %v455_v10 }
 0x2b0   :  { %832 = vmatprep.subr.bf16.mxu0 %v454_v11 }
 0x2b3   :  { %833 = vmatpush3.bf16.msra.mxu0 %v454_v11 }
 0x2b4   :  { %834 = vmatprep.subr.bf16.mxu0 %v453_v12 }
 0x2b7   :  { %835 = vmatpush3.bf16.msra.mxu0 %v453_v12 }
 0x2ba   :  { %837 = vmatmul.mubr.msk.bf16.vlgmr.msra.gmra.mxu0 %vm234_vm0, %v984_v26 }
 0x2bb   :  { %840 = vmatprep.mubr.msk.bf16.mxu0 %vm234_vm0, %v989_v27 }
 0x2c2   :  { %841 = vmatmul.mubr.msk.bf16.gmra.mxu0 %vm234_vm0, %v1004_v30 }
 0x37a   :  { %v838_v14 = vpop.f32.mrf.mxu0 }
 0x37b   :  { %v504_v15 = vadd.f32 %v838_v14, %v680_v13 }
 0x37c   :  { %v495_v16 = vpop.f32.mrf.mxu0 }
 0x37d   :  { %v496_v17 = vadd.f32 %v680_v13, %v495_v16  ;;  %530 = vmax.xlane.f32.xlu1 %v504_v15 }
 0x37e   :  { %v839_v18 = vpop.f32.mrf.mxu0 }
 0x37f   :  { %v507_v19 = vadd.f32 %v839_v18, %v680_v13  ;;  %526 = vmax.xlane.f32.xlu0 %v496_v17 }
 0x380   :  { %v498_v20 = vpop.f32.mrf.mxu0 }
 0x381   :  { %v499_v21 = vadd.f32 %v680_v13, %v498_v20  ;;  %532 = vmax.xlane.f32.xlu1 %v507_v19 }
 0x382   :  { %v842_v22 = vpop.f32.mrf.mxu0 }
 0x383   :  { %528 = vmax.xlane.f32.xlu0 %v499_v21  ;;  %v520_v27 = vadd.f32 %v842_v22, %v680_v13 }
 0x384   :  { %v511_v23 = vpop.f32.mrf.mxu0 }
 0x385   :  { %v512_v24 = vadd.f32 %v680_v13, %v511_v23 }
 0x386   :  { %v843_v25 = vpop.f32.mrf.mxu0 }
 0x387   :  { %534 = vmax.xlane.f32.xlu0 %v512_v24  ;;  %v523_v29 = vadd.f32 %v843_v25, %v680_v13 }
 0x388   :  { %v514_v26 = vpop.f32.mrf.mxu0 }
 0x389   :  { %v515_v28 = vadd.f32 %v680_v13, %v514_v26 }
 0x38b   :  { %536 = vmax.xlane.f32.xlu1 %v515_v28  ;;  %538 = vmax.xlane.f32.xlu0 %v520_v27 }
 0x38f   :  { %540 = vmax.xlane.f32.xlu1 %v523_v29 }
 0x406   :  { %v531_v30 = vpop.xlane.xlu1 %530 }
 0x407   :  { %v1035_v31 = vsub.f32 %v504_v15, %v531_v30 }
 0x408   :  { %v527_v32 = vpop.xlane.xlu0 %526 }
 0x409   :  { %v554_v33 = vmul.f32 1.442695, %v1035_v31  ;;  %v1038_v34 = vsub.f32 %v496_v17, %v527_v32 }
 0x40a   :  { %v533_v35 = vpop.xlane.xlu1 %532 }
 0x40b   :  { %871 = vpow2.f32 %v554_v33  ;;  %v550_v36 = vmul.f32 1.442695, %v1038_v34  ;;  %v1041_v37 = vsub.f32 %v507_v19, %v533_v35 }
 0x40c   :  { %v529_v38 = vpop.xlane.xlu0 %528 }
 0x40d   :  { %v556_v39 = vmul.f32 1.442695, %v1041_v37  ;;  %v1044_v40 = vsub.f32 %v499_v21, %v529_v38  ;;  %873 = vpow2.f32 %v550_v36 }
 0x40f   :  { %875 = vpow2.f32 %v556_v39  ;;  %v552_v41 = vmul.f32 1.442695, %v1044_v40 }
 0x410   :  { %v535_v42 = vpop.xlane.xlu0 %534 }
 0x411   :  { %v1047_v43 = vsub.f32 %v512_v24, %v535_v42  ;;  %877 = vpow2.f32 %v552_v41 }
 0x413   :  { %v558_v44 = vmul.f32 1.442695, %v1047_v43 }
 0x414   :  { %v537_v45 = vpop.xlane.xlu1 %536  ;;  %v539_v46 = vpop.xlane.xlu0 %538 }
 0x415   :  { %879 = vpow2.f32 %v558_v44  ;;  %v1050_v47 = vsub.f32 %v515_v28, %v537_v45  ;;  %v1052_v48 = vsub.f32 %v520_v27, %v539_v46 }
 0x417   :  { %v560_v49 = vmul.f32 1.442695, %v1050_v47  ;;  %v562_v50 = vmul.f32 1.442695, %v1052_v48 }
 0x418   :  { %v872_v51 = vpop.eup %871  ;;  %v541_v52 = vpop.xlane.xlu1 %540 }
 0x419   :  { %881 = vpow2.f32 %v560_v49  ;;  %v1056_v53 = vsub.f32 %v523_v29, %v541_v52  ;;  %570 = vadd.xlane.f32.xlu0 %v872_v51 }
 0x41a   :  { %883 = vpow2.f32 %v562_v50  ;;  %v874_v54 = vpop.eup %873 }
 0x41b   :  { %v564_v55 = vmul.f32 1.442695, %v1056_v53 }
 0x41c   :  { %v876_v56 = vpop.eup %875 }
 0x41d   :  { %885 = vpow2.f32 %v564_v55  ;;  %572 = vadd.xlane.f32.xlu1 %v876_v56  ;;  %566 = vadd.xlane.f32.xlu0 %v874_v54 }
 0x41e   :  { %v878_v57 = vpop.eup %877 }
 0x421   :  { %568 = vadd.xlane.f32.xlu1 %v878_v57 }
 0x422   :  { %v880_v58 = vpop.eup %879 }
 0x423   :  { %574 = vadd.xlane.f32.xlu0 %v880_v58 }
 0x426   :  { %v882_v59 = vpop.eup %881 }
 0x427   :  { %v884_v60 = vpop.eup %883  ;;  %576 = vadd.xlane.f32.xlu1 %v882_v59 }
 0x428   :  { %578 = vadd.xlane.f32.xlu0 %v884_v60 }
 0x42a   :  { %v886_v61 = vpop.eup %885 }
 0x42b   :  { %580 = vadd.xlane.f32.xlu1 %v886_v61 }
 0x4a2   :  { %v571_v62 = vpop.xlane.xlu0 %570 }
 0x4a3   :  { %887 = vlog2.f32 %v571_v62 }
 0x4a6   :  { %v573_v63 = vpop.xlane.xlu1 %572  ;;  %v567_v0 = vpop.xlane.xlu0 %566 }
 0x4a7   :  { %889 = vlog2.f32 %v573_v63 }
 0x4a8   :  { %891 = vlog2.f32 %v567_v0 }
 0x4aa   :  { %v569_v1 = vpop.xlane.xlu1 %568 }
 0x4ab   :  { %893 = vlog2.f32 %v569_v1 }
 0x4ac   :  { %v575_v2 = vpop.xlane.xlu0 %574 }
 0x4ad   :  { %895 = vlog2.f32 %v575_v2 }
 0x4b0   :  { %v888_v3 = vpop.eup %887  ;;  %v577_v4 = vpop.xlane.xlu1 %576 }
 0x4b1   :  { %897 = vlog2.f32 %v577_v4  ;;  %v579_v5 = vpop.xlane.xlu0 %578  ;;  %v587_v6 = vmul.f32 0.6931472, %v888_v3 }
 0x4b2   :  { %899 = vlog2.f32 %v579_v5 }
 0x4b3   :  { %v600_v11 = vsub.f32 %v1035_v31, %v587_v6 }
 0x4b4   :  { %v890_v7 = vpop.eup %889  ;;  %v581_v8 = vpop.xlane.xlu1 %580 }
 0x4b5   :  { %v892_v9 = vpop.eup %891  ;;  %v589_v10 = vmul.f32 0.6931472, %v890_v7  ;;  %901 = vlog2.f32 %v581_v8 }
 0x4b6   :  { %v583_v13 = vmul.f32 0.6931472, %v892_v9 }
 0x4b7   :  { %v601_v12 = vsub.f32 %v1041_v37, %v589_v10 }
 0x4b8   :  { %v894_v14 = vpop.eup %893  ;;  %v598_v18 = vsub.f32 %v1038_v34, %v583_v13 }
 0x4b9   :  { %v709_v15 = vpack.c.bf16 %v601_v12, %v600_v11  ;;  %v585_v16 = vmul.f32 0.6931472, %v894_v14 }
 0x4ba   :  { %v896_v17 = vpop.eup %895 }
 0x4bb   :  { %721 = vst [vmem:[%s1084_s5 + $0x8] sm:$0xff] %v709_v15   ;;  %v599_v19 = vsub.f32 %v1044_v40, %v585_v16  ;;  %v591_v21 = vmul.f32 0.6931472, %v896_v17 }
 0x4bd   :  { %v704_v20 = vpack.c.bf16 %v599_v19, %v598_v18  ;;  %v602_v25 = vsub.f32 %v1047_v43, %v591_v21 }
 0x4be   :  { %v898_v22 = vpop.eup %897 }
 0x4bf   :  { %v900_v23 = vpop.eup %899  ;;  %705 = vst [vmem:[%s1084_s5] sm:$0xff] %v704_v20   ;;  %v593_v24 = vmul.f32 0.6931472, %v898_v22 }
 0x4c0   :  { %v595_v27 = vmul.f32 0.6931472, %v900_v23 }
 0x4c1   :  { %v603_v26 = vsub.f32 %v1050_v47, %v593_v24 }
 0x4c2   :  { %v902_v28 = vpop.eup %901  ;;  %v604_v31 = vsub.f32 %v1052_v48, %v595_v27 }
 0x4c3   :  { %v714_v29 = vpack.c.bf16 %v603_v26, %v602_v25  ;;  %v597_v30 = vmul.f32 0.6931472, %v902_v28 }
 0x4c5   :  { %722 = vst [vmem:[%s1084_s5 + $0x10] sm:$0xff] %v714_v29   ;;  %v605_v32 = vsub.f32 %v1056_v53, %v597_v30 }
 0x4c7   :  { %v719_v33 = vpack.c.bf16 %v605_v32, %v604_v31 }
 0x4c9   :  { %723 = vst [vmem:[%s1084_s5 + $0x18] sm:$0xff] %v719_v33  }
 0x4ca   :  { %650 = vsyncpa [#allocation3], 1 }

</bundles_post_ra>
